<compile_context>
chip_gen: v7x
topology: tpu7x:2x2x1
jax: 0.10.0
libtpu: 0.0.40
codegen_flags: <defaults>
</compile_context>

<pallas_src>
import math

import jax
import jax.numpy as jnp
import numpy as np
from jax.experimental import pallas as pl
from jax.experimental.pallas import tpu as pltpu


# --------------------------------------------------------------------------
# Fused forward kernel.  No grid: the whole (tiny) batch fits in VMEM and
# BatchNorm needs cross-batch statistics, so everything runs in one program.
# --------------------------------------------------------------------------
def _make_gcn_kernel(batch, num_nodes, hidden_dim, embedding_dim, num_block,
                     bn_eps=1e-5, l2_eps=1e-12, mxu_dtype=jnp.bfloat16,
                     lane_reduce_on_mxu=True):
    """mxu_dtype: dtype of MXU *operands* (accumulation is always f32); None => f32.
    lane_reduce_on_mxu: do axis=-1 sums as a ones-matvec on the MXU instead of the XLU."""

    def mm_cast(t):
        # MXU-operand cast only; all elementwise / rsqrt / BN math stays f32.
        return t if mxu_dtype is None else t.astype(mxu_dtype)

    def kernel(x_ref, adj_ref, *refs):
        # Parameter refs are unpacked but NOT loaded here: each layer loads its own
        # weights at point of use, bounding vreg/VMEM live ranges.
        wf_ref, bf_ref = refs[0], refs[1]
        wb_refs = [(refs[2 + 2 * i], refs[3 + 2 * i]) for i in range(num_block)]
        base = 2 + 2 * num_block
        wl_ref, bl_ref = refs[base], refs[base + 1]
        wp_ref, bp_ref = refs[base + 2], refs[base + 3]
        out_ref = refs[base + 4]

        # adj arrives already in the MXU operand dtype (cast once in the wrapper).
        adj = adj_ref[...]                                      # [B, N, N]

        def lane_sum(t2):
            # Sum over the last (lane) axis of a 2-D [M, C] tensor, keepdims.
            # MXU ones-matvec keeps the scarce XLU cross-lane slot free (v6e/v7x);
            # always f32 operands so normalization precision is untouched.
            if lane_reduce_on_mxu:
                ones = jnp.ones((t2.shape[-1], 1), jnp.float32)
                return jax.lax.dot_general(
                    t2, ones, dimension_numbers=(((1,), (0,)), ((), ())),
                    preferred_element_type=jnp.float32)         # [M, 1]
            return jnp.sum(t2, axis=-1, keepdims=True)

        def graph_conv(h3, w_ref, b_ref):
            # y = adj @ h @ W + b, then F.normalize(p=2, dim=-1).
            z = jax.lax.dot_general(
                adj, mm_cast(h3),
                dimension_numbers=(((2,), (1,)), ((0,), (0,))),
                preferred_element_type=jnp.float32)             # [B, N, D] f32
            # Single fused [B*N, D] @ [D, E] projection.  The reshape only merges
            # the leading dims (num_nodes % 8 == 0 asserted) so it is a free relayout.
            z2 = z.reshape(batch * num_nodes, z.shape[-1])
            y = jnp.dot(mm_cast(z2), mm_cast(w_ref[...]),
                        preferred_element_type=jnp.float32) + b_ref[...]   # [B*N, E]
            # F.normalize: y * rsqrt(max(sum(y^2), eps^2)) — EUP rsqrt, f32 only.
            sumsq = lane_sum(y * y)
            return y * jax.lax.rsqrt(jnp.maximum(sumsq, l2_eps * l2_eps))   # [B*N, E]

        def relu_bn(y2, width):
            # ReLU, then nn.BatchNorm1d(num_nodes) in training mode: per-node stats
            # over (batch, feature), biased variance, gamma=1, beta=0.
            y2 = jnp.maximum(y2, 0.0)
            inv = 1.0 / float(batch * width)
            s = lane_sum(y2).reshape(batch, num_nodes, 1)
            sq = lane_sum(y2 * y2).reshape(batch, num_nodes, 1)
            mean = jnp.sum(s, axis=0, keepdims=True) * inv        # [1, N, 1]
            meansq = jnp.sum(sq, axis=0, keepdims=True) * inv     # [1, N, 1]
            var = jnp.maximum(meansq - mean * mean, 0.0)          # biased variance
            h3 = y2.reshape(batch, num_nodes, width)
            return (h3 - mean) * jax.lax.rsqrt(var + bn_eps)      # [B, N, C] f32

        def accumulate(acc, h3, off, width):
            # readout-max over nodes, folded immediately against the matching static
            # row-slice of Wp -> no feature concatenate; stays f32.
            r = jnp.max(h3, axis=1)                               # [B, C]
            contrib = jnp.dot(r, wp_ref[off:off + width, :],
                              preferred_element_type=jnp.float32) # [B, label]
            return (contrib if acc is None else acc + contrib), off + width

        # conv_first -> relu -> bn -> readout
        h = relu_bn(graph_conv(x_ref[...], wf_ref, bf_ref), hidden_dim)
        acc, off = accumulate(None, h, 0, hidden_dim)

        # conv_block layers
        for i in range(num_block):
            h = relu_bn(graph_conv(h, wb_refs[i][0], wb_refs[i][1]), hidden_dim)
            acc, off = accumulate(acc, h, off, hidden_dim)

        # conv_last (no act / bn) -> readout
        hl = graph_conv(h, wl_ref, bl_ref).reshape(batch, num_nodes, embedding_dim)
        acc, off = accumulate(acc, hl, off, embedding_dim)

        out_ref[...] = acc + bp_ref[...]       # one lane-contiguous store for the batch

    return kernel


def gcn_encoder_forward(x, adj, params, num_layers, label_dim,
                        mxu_dtype=jnp.bfloat16, lane_reduce_on_mxu=True):
    """params: dict with wf, bf, wb (list), bb (list), wl, bl, wp, bp."""
    batch, num_nodes, _ = x.shape
    num_block = num_layers - 2
    hidden_dim = params["wf"].shape[1]
    embedding_dim = params["wl"].shape[1]

    # Alignment invariants: keep the static Wp row-slices and the (B,N,C)<->(B*N,C)
    # leading-dim merges on f32 (8,128) sublane-tile boundaries.
    assert hidden_dim % 8 == 0 and embedding_dim % 8 == 0, "feature dims must be x8"
    assert num_nodes % 8 == 0, "num_nodes must be a multiple of 8"

    # Cast adj to the MXU operand dtype OUTSIDE the kernel: halves the dominant
    # HBM->VMEM bytes and avoids an extra in-VMEM cast copy of adj.
    adj_in = adj if mxu_dtype is None else adj.astype(mxu_dtype)

    inputs = [x, adj_in, params["wf"], params["bf"]]
    for i in range(num_block):
        inputs += [params["wb"][i], params["bb"][i]]
    inputs += [params["wl"], params["bl"], params["wp"], params["bp"]]

    kernel = _make_gcn_kernel(batch, num_nodes, hidden_dim, embedding_dim, num_block,
                              mxu_dtype=mxu_dtype,
                              lane_reduce_on_mxu=lane_reduce_on_mxu)

    # No grid => a single invocation, whole arrays resident in VMEM, and no useless
    # double-buffer allocation for the big adj input.
    vmem_spec = pl.BlockSpec(memory_space=pltpu.MemorySpace.VMEM)
    return pl.pallas_call(
        kernel,
        out_shape=jax.ShapeDtypeStruct((batch, label_dim), jnp.float32),
        in_specs=[vmem_spec] * len(inputs),
        out_specs=vmem_spec,
        # Explicit scoped-VMEM budget (v5e default is only 16 MiB; v7x physical 64 MiB).
        compiler_params=pltpu.CompilerParams(vmem_limit_bytes=32 * 1024 * 1024),
    )(*inputs)


# --------------------------------------------------------------------------
# Pure-JAX reference (correctness check against the kernel).  mxu_dtype builds a
# precision-matched reference for the bf16-operand path (f32 accumulation).
# --------------------------------------------------------------------------
def gcn_reference(x, adj, params, num_layers, mxu_dtype=None):
    def cast(t):
        return t if mxu_dtype is None else t.astype(mxu_dtype)

    adj_c = cast(adj)

    def gconv(h, w, b):
        y = jnp.einsum("bnm,bmd->bnd", adj_c, cast(h),
                       preferred_element_type=jnp.float32)
        y = jnp.einsum("bnd,de->bne", cast(y), cast(w),
                       preferred_element_type=jnp.float32) + b
        n = jnp.sqrt(jnp.sum(y * y, axis=-1, keepdims=True))
        return y / jnp.maximum(n, 1e-12)

    def bn(h):
        mean = jnp.mean(h, axis=(0, 2), keepdims=True)
        var = jnp.mean((h - mean) ** 2, axis=(0, 2), keepdims=True)
        return (h - mean) * jax.lax.rsqrt(var + 1e-5)

    outs = []
    h = bn(jax.nn.relu(gconv(x, params["wf"], params["bf"])))
    outs.append(jnp.max(h, axis=1))
    for i in range(num_layers - 2):
        h = bn(jax.nn.relu(gconv(h, params["wb"][i], params["bb"][i])))
        outs.append(jnp.max(h, axis=1))
    h = gconv(h, params["wl"], params["bl"])
    outs.append(jnp.max(h, axis=1))
    feat = jnp.concatenate(outs, axis=1)
    return feat @ params["wp"] + params["bp"]


# --------------------------------------------------------------------------
# Deterministic parameter construction (shapes follow the module's __init__).
# --------------------------------------------------------------------------
def make_params(key, input_dim, hidden_dim, embedding_dim, label_dim, num_layers):
    gain = math.sqrt(2.0)  # init.calculate_gain('relu')

    def xavier(k, fan_in, fan_out):
        bound = gain * math.sqrt(6.0 / (fan_in + fan_out))
        return jax.random.uniform(k, (fan_in, fan_out), jnp.float32, -bound, bound)

    keys = jax.random.split(key, 4 + (num_layers - 2))
    params = {
        "wf": xavier(keys[0], input_dim, hidden_dim),
        "bf": jnp.zeros((1, hidden_dim), jnp.float32),
        "wb": [xavier(keys[1 + i], hidden_dim, hidden_dim) for i in range(num_layers - 2)],
        "bb": [jnp.zeros((1, hidden_dim), jnp.float32) for _ in range(num_layers - 2)],
        "wl": xavier(keys[num_layers - 1], hidden_dim, embedding_dim),
        "bl": jnp.zeros((1, embedding_dim), jnp.float32),
    }
    pred_in = hidden_dim * (num_layers - 1) + embedding_dim  # concat=True
    kb = 1.0 / math.sqrt(pred_in)
    params["wp"] = jax.random.uniform(keys[num_layers], (pred_in, label_dim),
                                      jnp.float32, -kb, kb)
    params["bp"] = jax.random.uniform(keys[num_layers + 1], (1, label_dim),
                                      jnp.float32, -kb, kb)
    return params


if __name__ == "__main__":
    # Small shapes consistent with the module's forward.
    B, N = 2, 16
    input_dim, hidden_dim, embedding_dim, label_dim, num_layers = 8, 32, 32, 4, 3

    key = jax.random.PRNGKey(0)
    kx, kadj, kp = jax.random.split(key, 3)

    x = jax.random.normal(kx, (B, N, input_dim), jnp.float32)
    adj = jax.random.uniform(kadj, (B, N, N), jnp.float32)
    adj = 0.5 * (adj + jnp.swapaxes(adj, 1, 2))  # symmetric-ish adjacency

    params = make_params(kp, input_dim, hidden_dim, embedding_dim, label_dim, num_layers)

    # Default path: bf16 MXU operands + MXU lane reductions (f32 accumulation / norm / BN).
    ypred_bf16 = jax.block_until_ready(
        gcn_encoder_forward(x, adj, params, num_layers, label_dim))
    # Full-f32 MXU-operand path, kept available for tight-accuracy use.
    ypred_f32 = jax.block_until_ready(
        gcn_encoder_forward(x, adj, params, num_layers, label_dim, mxu_dtype=None))

    ref_f32 = jax.block_until_ready(gcn_reference(x, adj, params, num_layers))
    ref_bf16 = jax.block_until_ready(
        gcn_reference(x, adj, params, num_layers, mxu_dtype=jnp.bfloat16))

    assert ypred_bf16.shape == (B, label_dim) and ypred_f32.shape == (B, label_dim)

    # f32 kernel vs pure-f32 reference (tight).
    assert np.allclose(np.asarray(ypred_f32), np.asarray(ref_f32), rtol=2e-3, atol=2e-3), (
        "f32 kernel mismatch",
        float(np.max(np.abs(np.asarray(ypred_f32) - np.asarray(ref_f32)))))
    # bf16-operand kernel vs precision-matched reference (same casts, f32 accumulation).
    # Drift of the bf16 path vs the pure-f32 reference is ~1e-2 at these shapes; use
    # mxu_dtype=None where tighter end-to-end accuracy is required.
    assert np.allclose(np.asarray(ypred_bf16), np.asarray(ref_bf16), rtol=2e-3, atol=2e-3), (
        "bf16 kernel mismatch",
        float(np.max(np.abs(np.asarray(ypred_bf16) - np.asarray(ref_bf16)))))

    print("KERNEL_OK")
</pallas_src>

<mosaic_0001>
module attributes {stable_mosaic.version = 11 : i64} {
  func.func @kernel(%arg0: memref<2x16x8xf32, #tpu.memory_space<vmem>>, %arg1: memref<2x16x16xbf16, #tpu.memory_space<vmem>>, %arg2: memref<8x32xf32, #tpu.memory_space<vmem>>, %arg3: memref<1x32xf32, #tpu.memory_space<vmem>>, %arg4: memref<32x32xf32, #tpu.memory_space<vmem>>, %arg5: memref<1x32xf32, #tpu.memory_space<vmem>>, %arg6: memref<32x32xf32, #tpu.memory_space<vmem>>, %arg7: memref<1x32xf32, #tpu.memory_space<vmem>>, %arg8: memref<96x4xf32, #tpu.memory_space<vmem>>, %arg9: memref<1x4xf32, #tpu.memory_space<vmem>>, %arg10: memref<2x4xf32, #tpu.memory_space<vmem>>) attributes {dimension_semantics = [], scalar_prefetch = 0 : i64, scratch_operands = 0 : i64, tpu.core_type = #tpu.core_type<tc>} {
    %c0 = arith.constant 0 : index
    %c0_0 = arith.constant 0 : index
    %c0_1 = arith.constant 0 : index
    %0 = vector.load %arg1[%c0, %c0_0, %c0_1] : memref<2x16x16xbf16, #tpu.memory_space<vmem>>, vector<2x16x16xbf16>
    %c0_2 = arith.constant 0 : index
    %c0_3 = arith.constant 0 : index
    %c0_4 = arith.constant 0 : index
    %1 = vector.load %arg0[%c0_2, %c0_3, %c0_4] : memref<2x16x8xf32, #tpu.memory_space<vmem>>, vector<2x16x8xf32>
    %2 = arith.truncf %1 : vector<2x16x8xf32> to vector<2x16x8xbf16>
    %cst = arith.constant dense<0.000000e+00> : vector<2x16x8xf32>
    %3 = tpu.matmul %0, %2, %cst {dimension_numbers = #tpu.dot_dimension_numbers<[2], [1], [1], [2], [0, 0, 0, 1, 1, 2], [0], [0]>} : vector<2x16x16xbf16>, vector<2x16x8xbf16>, vector<2x16x8xf32> -> vector<2x16x8xf32>
    %4 = vector.shape_cast %3 : vector<2x16x8xf32> to vector<32x8xf32>
    %5 = arith.truncf %4 : vector<32x8xf32> to vector<32x8xbf16>
    %c0_5 = arith.constant 0 : index
    %c0_6 = arith.constant 0 : index
    %6 = vector.load %arg2[%c0_5, %c0_6] : memref<8x32xf32, #tpu.memory_space<vmem>>, vector<8x32xf32>
    %7 = arith.truncf %6 : vector<8x32xf32> to vector<8x32xbf16>
    %cst_7 = arith.constant dense<0.000000e+00> : vector<32x32xf32>
    %8 = tpu.matmul %5, %7, %cst_7 {dimension_numbers = #tpu.dot_dimension_numbers<[1], [0], [0], [1], [0, 0, 1, 1], [], []>} : vector<32x8xbf16>, vector<8x32xbf16>, vector<32x32xf32> -> vector<32x32xf32>
    %c0_8 = arith.constant 0 : index
    %c0_9 = arith.constant 0 : index
    %9 = vector.load %arg3[%c0_8, %c0_9] : memref<1x32xf32, #tpu.memory_space<vmem>>, vector<1x32xf32>
    %10 = vector.broadcast %9 : vector<1x32xf32> to vector<32x32xf32>
    %11 = arith.addf %8, %10 : vector<32x32xf32>
    %12 = arith.mulf %11, %11 : vector<32x32xf32>
    %cst_10 = arith.constant 1.000000e+00 : f32
    %13 = vector.broadcast %cst_10 : f32 to vector<32x1xf32>
    %cst_11 = arith.constant dense<0.000000e+00> : vector<32x1xf32>
    %14 = tpu.matmul %12, %13, %cst_11 {dimension_numbers = #tpu.dot_dimension_numbers<[1], [0], [0], [1], [0, 0, 1, 1], [], []>} : vector<32x32xf32>, vector<32x1xf32>, vector<32x1xf32> -> vector<32x1xf32>
    %cst_12 = arith.constant 1.000000e-24 : f32
    %15 = vector.broadcast %cst_12 : f32 to vector<32x1xf32>
    %16 = arith.maximumf %14, %15 : vector<32x1xf32>
    %17 = math.rsqrt %16 : vector<32x1xf32>
    %18 = vector.broadcast %17 : vector<32x1xf32> to vector<32x32xf32>
    %19 = arith.mulf %11, %18 : vector<32x32xf32>
    %cst_13 = arith.constant 0.000000e+00 : f32
    %20 = vector.broadcast %cst_13 : f32 to vector<32x32xf32>
    %21 = arith.maximumf %19, %20 : vector<32x32xf32>
    %cst_14 = arith.constant 1.000000e+00 : f32
    %22 = vector.broadcast %cst_14 : f32 to vector<32x1xf32>
    %cst_15 = arith.constant dense<0.000000e+00> : vector<32x1xf32>
    %23 = tpu.matmul %21, %22, %cst_15 {dimension_numbers = #tpu.dot_dimension_numbers<[1], [0], [0], [1], [0, 0, 1, 1], [], []>} : vector<32x32xf32>, vector<32x1xf32>, vector<32x1xf32> -> vector<32x1xf32>
    %24 = vector.shape_cast %23 : vector<32x1xf32> to vector<2x16x1xf32>
    %25 = arith.mulf %21, %21 : vector<32x32xf32>
    %cst_16 = arith.constant 1.000000e+00 : f32
    %26 = vector.broadcast %cst_16 : f32 to vector<32x1xf32>
    %cst_17 = arith.constant dense<0.000000e+00> : vector<32x1xf32>
    %27 = tpu.matmul %25, %26, %cst_17 {dimension_numbers = #tpu.dot_dimension_numbers<[1], [0], [0], [1], [0, 0, 1, 1], [], []>} : vector<32x32xf32>, vector<32x1xf32>, vector<32x1xf32> -> vector<32x1xf32>
    %28 = vector.shape_cast %27 : vector<32x1xf32> to vector<2x16x1xf32>
    %cst_18 = arith.constant dense<0.000000e+00> : vector<16x1xf32>
    %29 = vector.multi_reduction <add>, %24, %cst_18 [0] : vector<2x16x1xf32> to vector<16x1xf32>
    %30 = vector.shape_cast %29 : vector<16x1xf32> to vector<1x16x1xf32>
    %cst_19 = arith.constant 1.562500e-02 : f32
    %31 = vector.broadcast %cst_19 : f32 to vector<1x16x1xf32>
    %32 = arith.mulf %30, %31 : vector<1x16x1xf32>
    %cst_20 = arith.constant dense<0.000000e+00> : vector<16x1xf32>
    %33 = vector.multi_reduction <add>, %28, %cst_20 [0] : vector<2x16x1xf32> to vector<16x1xf32>
    %34 = vector.shape_cast %33 : vector<16x1xf32> to vector<1x16x1xf32>
    %cst_21 = arith.constant 1.562500e-02 : f32
    %35 = vector.broadcast %cst_21 : f32 to vector<1x16x1xf32>
    %36 = arith.mulf %34, %35 : vector<1x16x1xf32>
    %37 = arith.mulf %32, %32 : vector<1x16x1xf32>
    %38 = arith.subf %36, %37 : vector<1x16x1xf32>
    %cst_22 = arith.constant 0.000000e+00 : f32
    %39 = vector.broadcast %cst_22 : f32 to vector<1x16x1xf32>
    %40 = arith.maximumf %38, %39 : vector<1x16x1xf32>
    %41 = vector.shape_cast %21 : vector<32x32xf32> to vector<2x16x32xf32>
    %42 = vector.broadcast %32 : vector<1x16x1xf32> to vector<2x16x32xf32>
    %43 = arith.subf %41, %42 : vector<2x16x32xf32>
    %cst_23 = arith.constant 9.99999974E-6 : f32
    %44 = vector.broadcast %cst_23 : f32 to vector<1x16x1xf32>
    %45 = arith.addf %40, %44 : vector<1x16x1xf32>
    %46 = math.rsqrt %45 : vector<1x16x1xf32>
    %47 = vector.broadcast %46 : vector<1x16x1xf32> to vector<2x16x32xf32>
    %48 = arith.mulf %43, %47 : vector<2x16x32xf32>
    %cst_24 = arith.constant dense<0xFF800000> : vector<2x32xf32>
    %49 = vector.multi_reduction <maximumf>, %48, %cst_24 [1] : vector<2x16x32xf32> to vector<2x32xf32>
    %c0_25 = arith.constant 0 : index
    %c0_26 = arith.constant 0 : index
    %50 = vector.load %arg8[%c0_25, %c0_26] : memref<96x4xf32, #tpu.memory_space<vmem>>, vector<32x4xf32>
    %cst_27 = arith.constant dense<0.000000e+00> : vector<2x4xf32>
    %51 = tpu.matmul %49, %50, %cst_27 {dimension_numbers = #tpu.dot_dimension_numbers<[1], [0], [0], [1], [0, 0, 1, 1], [], []>} : vector<2x32xf32>, vector<32x4xf32>, vector<2x4xf32> -> vector<2x4xf32>
    %52 = arith.truncf %48 : vector<2x16x32xf32> to vector<2x16x32xbf16>
    %cst_28 = arith.constant dense<0.000000e+00> : vector<2x16x32xf32>
    %53 = tpu.matmul %0, %52, %cst_28 {dimension_numbers = #tpu.dot_dimension_numbers<[2], [1], [1], [2], [0, 0, 0, 1, 1, 2], [0], [0]>} : vector<2x16x16xbf16>, vector<2x16x32xbf16>, vector<2x16x32xf32> -> vector<2x16x32xf32>
    %54 = vector.shape_cast %53 : vector<2x16x32xf32> to vector<32x32xf32>
    %55 = arith.truncf %54 : vector<32x32xf32> to vector<32x32xbf16>
    %c0_29 = arith.constant 0 : index
    %c0_30 = arith.constant 0 : index
    %56 = vector.load %arg4[%c0_29, %c0_30] : memref<32x32xf32, #tpu.memory_space<vmem>>, vector<32x32xf32>
    %57 = arith.truncf %56 : vector<32x32xf32> to vector<32x32xbf16>
    %cst_31 = arith.constant dense<0.000000e+00> : vector<32x32xf32>
    %58 = tpu.matmul %55, %57, %cst_31 {dimension_numbers = #tpu.dot_dimension_numbers<[1], [0], [0], [1], [0, 0, 1, 1], [], []>} : vector<32x32xbf16>, vector<32x32xbf16>, vector<32x32xf32> -> vector<32x32xf32>
    %c0_32 = arith.constant 0 : index
    %c0_33 = arith.constant 0 : index
    %59 = vector.load %arg5[%c0_32, %c0_33] : memref<1x32xf32, #tpu.memory_space<vmem>>, vector<1x32xf32>
    %60 = vector.broadcast %59 : vector<1x32xf32> to vector<32x32xf32>
    %61 = arith.addf %58, %60 : vector<32x32xf32>
    %62 = arith.mulf %61, %61 : vector<32x32xf32>
    %cst_34 = arith.constant 1.000000e+00 : f32
    %63 = vector.broadcast %cst_34 : f32 to vector<32x1xf32>
    %cst_35 = arith.constant dense<0.000000e+00> : vector<32x1xf32>
    %64 = tpu.matmul %62, %63, %cst_35 {dimension_numbers = #tpu.dot_dimension_numbers<[1], [0], [0], [1], [0, 0, 1, 1], [], []>} : vector<32x32xf32>, vector<32x1xf32>, vector<32x1xf32> -> vector<32x1xf32>
    %cst_36 = arith.constant 1.000000e-24 : f32
    %65 = vector.broadcast %cst_36 : f32 to vector<32x1xf32>
    %66 = arith.maximumf %64, %65 : vector<32x1xf32>
    %67 = math.rsqrt %66 : vector<32x1xf32>
    %68 = vector.broadcast %67 : vector<32x1xf32> to vector<32x32xf32>
    %69 = arith.mulf %61, %68 : vector<32x32xf32>
    %cst_37 = arith.constant 0.000000e+00 : f32
    %70 = vector.broadcast %cst_37 : f32 to vector<32x32xf32>
    %71 = arith.maximumf %69, %70 : vector<32x32xf32>
    %cst_38 = arith.constant 1.000000e+00 : f32
    %72 = vector.broadcast %cst_38 : f32 to vector<32x1xf32>
    %cst_39 = arith.constant dense<0.000000e+00> : vector<32x1xf32>
    %73 = tpu.matmul %71, %72, %cst_39 {dimension_numbers = #tpu.dot_dimension_numbers<[1], [0], [0], [1], [0, 0, 1, 1], [], []>} : vector<32x32xf32>, vector<32x1xf32>, vector<32x1xf32> -> vector<32x1xf32>
    %74 = vector.shape_cast %73 : vector<32x1xf32> to vector<2x16x1xf32>
    %75 = arith.mulf %71, %71 : vector<32x32xf32>
    %cst_40 = arith.constant 1.000000e+00 : f32
    %76 = vector.broadcast %cst_40 : f32 to vector<32x1xf32>
    %cst_41 = arith.constant dense<0.000000e+00> : vector<32x1xf32>
    %77 = tpu.matmul %75, %76, %cst_41 {dimension_numbers = #tpu.dot_dimension_numbers<[1], [0], [0], [1], [0, 0, 1, 1], [], []>} : vector<32x32xf32>, vector<32x1xf32>, vector<32x1xf32> -> vector<32x1xf32>
    %78 = vector.shape_cast %77 : vector<32x1xf32> to vector<2x16x1xf32>
    %cst_42 = arith.constant dense<0.000000e+00> : vector<16x1xf32>
    %79 = vector.multi_reduction <add>, %74, %cst_42 [0] : vector<2x16x1xf32> to vector<16x1xf32>
    %80 = vector.shape_cast %79 : vector<16x1xf32> to vector<1x16x1xf32>
    %cst_43 = arith.constant 1.562500e-02 : f32
    %81 = vector.broadcast %cst_43 : f32 to vector<1x16x1xf32>
    %82 = arith.mulf %80, %81 : vector<1x16x1xf32>
    %cst_44 = arith.constant dense<0.000000e+00> : vector<16x1xf32>
    %83 = vector.multi_reduction <add>, %78, %cst_44 [0] : vector<2x16x1xf32> to vector<16x1xf32>
    %84 = vector.shape_cast %83 : vector<16x1xf32> to vector<1x16x1xf32>
    %cst_45 = arith.constant 1.562500e-02 : f32
    %85 = vector.broadcast %cst_45 : f32 to vector<1x16x1xf32>
    %86 = arith.mulf %84, %85 : vector<1x16x1xf32>
    %87 = arith.mulf %82, %82 : vector<1x16x1xf32>
    %88 = arith.subf %86, %87 : vector<1x16x1xf32>
    %cst_46 = arith.constant 0.000000e+00 : f32
    %89 = vector.broadcast %cst_46 : f32 to vector<1x16x1xf32>
    %90 = arith.maximumf %88, %89 : vector<1x16x1xf32>
    %91 = vector.shape_cast %71 : vector<32x32xf32> to vector<2x16x32xf32>
    %92 = vector.broadcast %82 : vector<1x16x1xf32> to vector<2x16x32xf32>
    %93 = arith.subf %91, %92 : vector<2x16x32xf32>
    %cst_47 = arith.constant 9.99999974E-6 : f32
    %94 = vector.broadcast %cst_47 : f32 to vector<1x16x1xf32>
    %95 = arith.addf %90, %94 : vector<1x16x1xf32>
    %96 = math.rsqrt %95 : vector<1x16x1xf32>
    %97 = vector.broadcast %96 : vector<1x16x1xf32> to vector<2x16x32xf32>
    %98 = arith.mulf %93, %97 : vector<2x16x32xf32>
    %cst_48 = arith.constant dense<0xFF800000> : vector<2x32xf32>
    %99 = vector.multi_reduction <maximumf>, %98, %cst_48 [1] : vector<2x16x32xf32> to vector<2x32xf32>
    %c32 = arith.constant 32 : index
    %c0_49 = arith.constant 0 : index
    %100 = vector.load %arg8[%c32, %c0_49] : memref<96x4xf32, #tpu.memory_space<vmem>>, vector<32x4xf32>
    %cst_50 = arith.constant dense<0.000000e+00> : vector<2x4xf32>
    %101 = tpu.matmul %99, %100, %cst_50 {dimension_numbers = #tpu.dot_dimension_numbers<[1], [0], [0], [1], [0, 0, 1, 1], [], []>} : vector<2x32xf32>, vector<32x4xf32>, vector<2x4xf32> -> vector<2x4xf32>
    %102 = arith.addf %51, %101 : vector<2x4xf32>
    %103 = arith.truncf %98 : vector<2x16x32xf32> to vector<2x16x32xbf16>
    %cst_51 = arith.constant dense<0.000000e+00> : vector<2x16x32xf32>
    %104 = tpu.matmul %0, %103, %cst_51 {dimension_numbers = #tpu.dot_dimension_numbers<[2], [1], [1], [2], [0, 0, 0, 1, 1, 2], [0], [0]>} : vector<2x16x16xbf16>, vector<2x16x32xbf16>, vector<2x16x32xf32> -> vector<2x16x32xf32>
    %105 = vector.shape_cast %104 : vector<2x16x32xf32> to vector<32x32xf32>
    %106 = arith.truncf %105 : vector<32x32xf32> to vector<32x32xbf16>
    %c0_52 = arith.constant 0 : index
    %c0_53 = arith.constant 0 : index
    %107 = vector.load %arg6[%c0_52, %c0_53] : memref<32x32xf32, #tpu.memory_space<vmem>>, vector<32x32xf32>
    %108 = arith.truncf %107 : vector<32x32xf32> to vector<32x32xbf16>
    %cst_54 = arith.constant dense<0.000000e+00> : vector<32x32xf32>
    %109 = tpu.matmul %106, %108, %cst_54 {dimension_numbers = #tpu.dot_dimension_numbers<[1], [0], [0], [1], [0, 0, 1, 1], [], []>} : vector<32x32xbf16>, vector<32x32xbf16>, vector<32x32xf32> -> vector<32x32xf32>
    %c0_55 = arith.constant 0 : index
    %c0_56 = arith.constant 0 : index
    %110 = vector.load %arg7[%c0_55, %c0_56] : memref<1x32xf32, #tpu.memory_space<vmem>>, vector<1x32xf32>
    %111 = vector.broadcast %110 : vector<1x32xf32> to vector<32x32xf32>
    %112 = arith.addf %109, %111 : vector<32x32xf32>
    %113 = arith.mulf %112, %112 : vector<32x32xf32>
    %cst_57 = arith.constant 1.000000e+00 : f32
    %114 = vector.broadcast %cst_57 : f32 to vector<32x1xf32>
    %cst_58 = arith.constant dense<0.000000e+00> : vector<32x1xf32>
    %115 = tpu.matmul %113, %114, %cst_58 {dimension_numbers = #tpu.dot_dimension_numbers<[1], [0], [0], [1], [0, 0, 1, 1], [], []>} : vector<32x32xf32>, vector<32x1xf32>, vector<32x1xf32> -> vector<32x1xf32>
    %cst_59 = arith.constant 1.000000e-24 : f32
    %116 = vector.broadcast %cst_59 : f32 to vector<32x1xf32>
    %117 = arith.maximumf %115, %116 : vector<32x1xf32>
    %118 = math.rsqrt %117 : vector<32x1xf32>
    %119 = vector.broadcast %118 : vector<32x1xf32> to vector<32x32xf32>
    %120 = arith.mulf %112, %119 : vector<32x32xf32>
    %121 = vector.shape_cast %120 : vector<32x32xf32> to vector<2x16x32xf32>
    %cst_60 = arith.constant dense<0xFF800000> : vector<2x32xf32>
    %122 = vector.multi_reduction <maximumf>, %121, %cst_60 [1] : vector<2x16x32xf32> to vector<2x32xf32>
    %c64 = arith.constant 64 : index
    %c0_61 = arith.constant 0 : index
    %123 = vector.load %arg8[%c64, %c0_61] : memref<96x4xf32, #tpu.memory_space<vmem>>, vector<32x4xf32>
    %cst_62 = arith.constant dense<0.000000e+00> : vector<2x4xf32>
    %124 = tpu.matmul %122, %123, %cst_62 {dimension_numbers = #tpu.dot_dimension_numbers<[1], [0], [0], [1], [0, 0, 1, 1], [], []>} : vector<2x32xf32>, vector<32x4xf32>, vector<2x4xf32> -> vector<2x4xf32>
    %125 = arith.addf %102, %124 : vector<2x4xf32>
    %c0_63 = arith.constant 0 : index
    %c0_64 = arith.constant 0 : index
    %126 = vector.load %arg9[%c0_63, %c0_64] : memref<1x4xf32, #tpu.memory_space<vmem>>, vector<1x4xf32>
    %127 = vector.broadcast %126 : vector<1x4xf32> to vector<2x4xf32>
    %128 = arith.addf %125, %127 : vector<2x4xf32>
    %c0_65 = arith.constant 0 : index
    %c0_66 = arith.constant 0 : index
    %129 = vector.load %arg10[%c0_65, %c0_66] : memref<2x4xf32, #tpu.memory_space<vmem>>, vector<2x4xf32>
    tpu.vector_store %arg10[%c0_65, %c0_66], %128 {strides = array<i32>} : memref<2x4xf32, #tpu.memory_space<vmem>>, vector<2x4xf32>,
    return
  }
}

</mosaic_0001>

<bundles_post_ra>
// kernel: tpu_custom_call.1
= control target key start
LH: loop header
LB: loop body
LE: loop exit
PB: predicated region body
PF: predicated region fallthrough
CT: control target
= control target key end

     0   :  { %v2200_v3 = vmov 0.0   ;;  %vm2201_vm0 = vmmov 0   ;;  %vm52_vm1 = vcmask 130048   ;;  %s2557_s0 = inlined_call_operand.vmem [shape: f32[2,16,8], index: 0, kind: input, shape index: {}]   ;;  %s2558_s1 = inlined_call_operand.vmem [shape: bf16[2,16,16], index: 1, kind: input, shape index: {}]   ;;  %s2559_s2 = inlined_call_operand.vmem [shape: f32[8,32], index: 2, kind: input, shape index: {}]   ;;  %s2560_s3 = inlined_call_operand.vmem [shape: f32[1,32], index: 3, kind: input, shape index: {}]   ;;  %s2561_s4 = inlined_call_operand.vmem [shape: f32[32,32], index: 4, kind: input, shape index: {}]   ;;  %s2562_s5 = inlined_call_operand.vmem [shape: f32[1,32], index: 5, kind: input, shape index: {}]   ;;  %s2563_s6 = inlined_call_operand.vmem [shape: f32[32,32], index: 6, kind: input, shape index: {}]   ;;  %s2564_s7 = inlined_call_operand.vmem [shape: f32[1,32], index: 7, kind: input, shape index: {}]   ;;  %s2565_s8 = inlined_call_operand.vmem [shape: f32[96,4], index: 8, kind: input, shape index: {}]   ;;  %s2566_s9 = inlined_call_operand.vmem [shape: f32[1,4], index: 9, kind: input, shape index: {}]   ;;  %s2567_s10 = inlined_call_operand.hbm [shape: f32[2,4], index: 10, kind: output, shape index: {}]  }
   0x1   :  { %v41_v0 = vld [vmem:[%s2557_s0] sm:$0xff]  ;;  %v42_v1 = vld [vmem:[%s2557_s0 + $0x8] sm:$0xff]  ;;  %v43_v2 = vld [vmem:[%s2557_s0 + $0x10] sm:$0xff]  ;;  %1898 = vmatprep.subr.bf16.mxu0 %v2200_v3  ;;  %1904 = vmatprep.subr.bf16.mxu1 %v2200_v3 }
   0x2   :  { %v45_v4 = vpack.c.bf16 %v42_v1, %v41_v0  ;;  %v44_v5 = vld [vmem:[%s2557_s0 + $0x18] sm:$0xff]  ;;  %1900 = vmatprep.mubr.msk.bf16.mxu0 %vm2201_vm0, %v2200_v3  ;;  %1906 = vmatprep.mubr.msk.bf16.mxu1 %vm2201_vm0, %v2200_v3  ;;  %v2282_v7 = vld [vmem:[%s2558_s1] sm:$0xff]   ;;  %v2287_v8 = vld [vmem:[%s2558_s1 + $0x8] sm:$0xff]  }
   0x3   :  { %v46_v6 = vpack.c.bf16 %v44_v5, %v43_v2 }
   0x4   :  { %1899 = vmatpush3.bf16.msra.mxu0 %v45_v4 }
   0x5   :  { %15 = vsyncpa [#allocation3], 0  ;;  %1905 = vmatpush3.bf16.msra.mxu1 %v46_v6  ;;  %v148_v9 = vld [vmem:[%s2559_s2] sm:$0xff]  ;;  %vm164_vm2 = vcmask 1043456   ;;  %vm157_vm3 = vcmask 64512   ;;  %vm221_vm4 = vcmask 261120  }
   0x6   :  { %v149_v10 = vpack.c.bf16 %v148_v9, %v148_v9  ;;  %v2202_v22 = vmov 1.0|1.0   ;;  %v1759_v23 = vld [vmem:[%s2560_s3] ss:$0 sm:$0xff]  ;;  %v2203_v36 = vmov 0   ;;  %vm553_vm5 = vcmask 7168  }
   0x7   :  { %1901 = vmatmul.mubr.msk.bf16.vlgmr.msra.gmra.mrb[0].mxu0 %vm52_vm1, %v2282_v7  ;;  %2087 = vmatprep.subr.bf16.mxu1 %v2202_v22  ;;  %vm1197_vm6 = vcmask 1041409   ;;  %s2205_s20 = smov [#allocation2]   ;;  %vm1739_vm7 = vcmask 25600  }
   0x8   :  { %1907 = vmatmul.mubr.msk.bf16.vlgmr.msra.gmra.mrb[0].mxu1 %vm52_vm1, %v2287_v8  ;;  %2133 = vmatprep.subr.msk.bf16.mxu0 %vm164_vm2, %v149_v10  ;;  %v166_v11 = vsel %vm164_vm2, %v149_v10, 0  ;;  %s1747_s21 = sshll.u32 %s2205_s20, 4  ;;  %s1748_s21 = int_to_ptr.vmem [resolvable:$true] %s1747_s21 }
   0x9   :  { %1911 = vmatpush3.bf16.msra.mxu0 %v166_v11  ;;  %2088 = vmatpush3.bf16.msra.mxu1 %v2202_v22  ;;  %s2176_s22 = scalar_lea.vmem %s1748_s21, 32  ;;  %p2181_p1 = scmp.lt.s32.totalorder %s1748_s21, %s1748_s21 }
   0xa   :  { %2091 = vmatprep.subr.bf16.mxu0 %v2202_v22  ;;  %2089 = vmatprep.subr.bf16.mxu1 %v2202_v22  ;;  %p2177_p0 = scmp.ne.s32.totalorder %s1748_s21, %s2176_s22  ;;  %p2182_p2 = scmp.lt.s32.totalorder %s2176_s22, %s2176_s22 }
   0xb   :  { %2140 = vset.pattern.permute.xlu0 %v2203_v36  ;;  %2141 = vset.pattern.permute.xlu1 %v2203_v36 }
   0xc   :  { %p2183_p3 = por %p2182_p2, %p2181_p1 }
   0xd   :  { %2090 = vmatpush3.bf16.msra.mxu1 %v2202_v22 }
   0xe   :  { %2095 = vmatprep.subr.bf16.mxu1 %v2202_v22  ;;  %p2184_p4 = pnand %p2183_p3, %p2177_p0 }
  0xda   :  { %v90_v12 = vpop.f32.mrb[0].mxu0 }
  0xdb   :  { %v139_v13 = vpop.f32.mrb[0].mxu1  ;;  %v1902_v14 = vpop.f32.mrb[1].mxu0 }
  0xdc   :  { %v1908_v15 = vpop.f32.mrb[1].mxu1  ;;  %v93_v16 = vpop.f32.mrb[2].mxu0 }
  0xdd   :  { %v146_v17 = vpack.c.bf16 %v93_v16, %v90_v12  ;;  %v142_v18 = vpop.f32.mrb[2].mxu1  ;;  %v1903_v19 = vpop.f32.mrb[3].mxu0 }
  0xde   :  { %v147_v20 = vpack.c.bf16 %v142_v18, %v139_v13  ;;  %v1909_v21 = vpop.f32.mrb[3].mxu1 }
  0xdf   :  { %1912 = vmatprep.mubr.msk.bf16.mxu0 %vm157_vm3, %v146_v17 }
  0xe0   :  { %1913 = vmatmul.mubr.msk.bf16.vlgmr.msra.gmra.mrb[4].mxu0 %vm157_vm3, %v147_v20 }
  0xe1   :  { %2092 = vmatpush3.bf16.msra.mxu0 %v2202_v22 }
  0xe2   :  { %2093 = vmatprep.subr.bf16.mxu0 %v2202_v22 }
  0xe5   :  { %2094 = vmatpush3.bf16.msra.mxu0 %v2202_v22 }
  0xe6   :  { %1958 = vmatprep.subr.bf16.mxu0 %v2200_v3 }
 0x1b3   :  { %v1914_v24 = vpop.f32.mrb[4].mxu0 }
 0x1b4   :  { %v202_v25 = vpop.f32.mrb[5].mxu0  ;;  %v211_v28 = vadd.f32 %v1914_v24, %v1759_v23 }
 0x1b5   :  { %v203_v26 = vadd.f32 %v1759_v23, %v202_v25  ;;  %v1915_v27 = vpop.f32.mrb[6].mxu0 }
 0x1b6   :  { %v205_v29 = vpop.f32.mrb[7].mxu0  ;;  %v214_v32 = vadd.f32 %v1915_v27, %v1759_v23  ;;  %v219_v34 = vmul.f32 %v211_v28, %v211_v28 }
 0x1b7   :  { %v217_v30 = vmul.f32 %v203_v26, %v203_v26  ;;  %v206_v31 = vadd.f32 %v1759_v23, %v205_v29 }
 0x1b8   :  { %v220_v35 = vmul.f32 %v214_v32, %v214_v32 }
 0x1b9   :  { %v218_v33 = vmul.f32 %v206_v31, %v206_v31  ;;  %1924 = vmatprep.mubr.msk.f32.mxu1 %vm221_vm4, %v217_v30 }
 0x1bb   :  { %1925 = vmatmul.mubr.msk.f32.vlgmr.msra.gmra.mrb[4].mxu1 %vm221_vm4, %v218_v33 }
 0x1bc   :  { %1927 = vmatprep.mubr.msk.f32.mxu1 %vm221_vm4, %v219_v34  ;;  %2096 = vmatpush3.bf16.msra.mxu1 %v2202_v22 }
 0x1bd   :  { %2097 = vmatprep.subr.bf16.mxu1 %v2202_v22 }
 0x1bf   :  { %1928 = vmatmul.mubr.msk.f32.gmra.mrb[6].mxu1 %vm221_vm4, %v220_v35 }
 0x1c0   :  { %2098 = vmatpush3.bf16.msra.mxu1 %v2202_v22 }
 0x1c1   :  { %1964 = vmatprep.subr.bf16.mxu1 %v2200_v3 }
 0x28e   :  { %v1926_v37 = vpop.f32.mrb[4].mxu1 }
 0x28f   :  { %v300_v38 = vpop.f32.mrb[5].mxu1  ;;  %v320_v40 = vmax.f32 %v1926_v37, 1e-24 }
 0x290   :  { %v319_v39 = vmax.f32 %v300_v38, 1e-24 }
 0x292   :  { %2144 = vrsqrt.f32 %v319_v39  ;;  %v1929_v41 = vpop.f32.mrb[6].mxu1 }
 0x293   :  { %v310_v42 = vpop.f32.mrb[7].mxu1  ;;  %2146 = vrsqrt.f32 %v320_v40  ;;  %v322_v44 = vmax.f32 %v1929_v41, 1e-24 }
 0x294   :  { %v321_v43 = vmax.f32 %v310_v42, 1e-24 }
 0x296   :  { %2148 = vrsqrt.f32 %v321_v43 }
 0x297   :  { %2150 = vrsqrt.f32 %v322_v44 }
 0x29c   :  { %v2145_v45 = vpop.eup %2144 }
 0x29d   :  { %329 = vperm.xlu0 %2140, %v2145_v45   ;;  %v2147_v46 = vpop.eup %2146 }
 0x2a0   :  { %v2149_v47 = vpop.eup %2148 }
 0x2a1   :  { %334 = vperm.xlu0 %2140, %v2147_v46   ;;  %339 = vperm.xlu1 %2141, %v2149_v47   ;;  %v2151_v48 = vpop.eup %2150  ;;  %v716_v46 = vld [vmem:[%s2561_s4] sm:$0xff]  ;;  %v717_v47 = vld [vmem:[%s2561_s4 + $0x8] sm:$0xff] }
 0x2a5   :  { %344 = vperm.xlu1 %2141, %v2151_v48  }
 0x31c   :  { %v330_v49 = vpop.permute.xlu0 %329 }
 0x31d   :  { %v347_v50 = vmul.f32 %v330_v49, %v203_v26 }
 0x31f   :  { %v2317_v51 = vmax.f32 %v347_v50, 0.0 }
 0x320   :  { %v335_v52 = vpop.permute.xlu0 %334  ;;  %v340_v53 = vpop.permute.xlu1 %339 }
 0x321   :  { %v452_v54 = vmul.f32 %v2317_v51, %v2317_v51  ;;  %v348_v55 = vmul.f32 %v335_v52, %v206_v31  ;;  %v349_v56 = vmul.f32 %v340_v53, %v211_v28  ;;  %1938 = vmatprep.mubr.msk.f32.mxu0 %vm221_vm4, %v2317_v51 }
 0x323   :  { %v2323_v57 = vmax.f32 %v348_v55, 0.0  ;;  %v2325_v58 = vmax.f32 %v349_v56, 0.0  ;;  %1952 = vmatprep.mubr.msk.f32.mxu1 %vm221_vm4, %v452_v54  ;;  %v720_v55 = vpack.c.bf16 %v717_v47, %v716_v46 }
 0x324   :  { %v345_v59 = vpop.permute.xlu1 %344 }
 0x325   :  { %v453_v60 = vmul.f32 %v2323_v57, %v2323_v57  ;;  %v454_v61 = vmul.f32 %v2325_v58, %v2325_v58  ;;  %v350_v62 = vmul.f32 %v345_v59, %v214_v32  ;;  %1939 = vmatmul.mubr.msk.f32.vlgmr.msra.gmra.mrb[8].mxu0 %vm221_vm4, %v2323_v57 }
 0x326   :  { %1941 = vmatprep.mubr.msk.f32.mxu0 %vm221_vm4, %v2325_v58 }
 0x327   :  { %v354_v63 = vmax.f32 %v350_v62, 0.0  ;;  %1953 = vmatmul.mubr.msk.f32.vlgmr.msra.gmra.mrb[8].mxu1 %vm221_vm4, %v453_v60 }
 0x328   :  { %1955 = vmatprep.mubr.msk.f32.mxu1 %vm221_vm4, %v454_v61 }
 0x329   :  { %v455_v0 = vmul.f32 %v354_v63, %v354_v63  ;;  %1942 = vmatmul.mubr.msk.f32.gmra.mrb[10].mxu0 %vm221_vm4, %v354_v63 }
 0x32a   :  { %1960 = vmatprep.mubr.msk.bf16.mxu0 %vm2201_vm0, %v2200_v3 }
 0x32b   :  { %1956 = vmatmul.mubr.msk.f32.gmra.mrb[10].mxu1 %vm221_vm4, %v455_v0 }
 0x32c   :  { %1966 = vmatprep.mubr.msk.bf16.mxu1 %vm2201_vm0, %v2200_v3 }
 0x3f8   :  { %v1940_v1 = vpop.f32.mrb[8].mxu0 }
 0x3f9   :  { %v433_v2 = vpop.f32.mrb[9].mxu0  ;;  %v557_v9 = vsel %vm553_vm5, %v1940_v1, 0.0 }
 0x3fa   :  { %v1954_v4 = vpop.f32.mrb[8].mxu1  ;;  %v554_v12 = vsel %vm553_vm5, %v433_v2, 0.0 }
 0x3fb   :  { %v534_v5 = vpop.f32.mrb[9].mxu1  ;;  %v565_v16 = vsel %vm553_vm5, %v1954_v4, 0.0 }
 0x3fc   :  { %v1943_v6 = vpop.f32.mrb[10].mxu0  ;;  %v562_v20 = vsel %vm553_vm5, %v534_v5, 0.0 }
 0x3fd   :  { %v558_v10 = vsel %vm553_vm5, %v1943_v6, 0.0  ;;  %v443_v11 = vpop.f32.mrb[11].mxu0 }
 0x3fe   :  { %v559_v13 = vadd.f32 %v558_v10, %v557_v9  ;;  %v555_v14 = vsel %vm553_vm5, %v443_v11, 0.0  ;;  %v1957_v15 = vpop.f32.mrb[10].mxu1 }
 0x3ff   :  { %v556_v17 = vadd.f32 %v555_v14, %v554_v12  ;;  %v566_v18 = vsel %vm553_vm5, %v1957_v15, 0.0  ;;  %v544_v19 = vpop.f32.mrb[11].mxu1  ;;  %v718_v14 = vld [vmem:[%s2561_s4 + $0x10] sm:$0xff]  ;;  %v719_v15 = vld [vmem:[%s2561_s4 + $0x18] sm:$0xff] }
 0x400   :  { %v561_v21 = vmul.f32 0.015625, %v559_v13  ;;  %v567_v23 = vadd.f32 %v566_v18, %v565_v16  ;;  %v563_v24 = vsel %vm553_vm5, %v544_v19, 0.0  ;;  %v721_v16 = vpack.c.bf16 %v719_v15, %v718_v14 }
 0x401   :  { %v560_v25 = vmul.f32 0.015625, %v556_v17  ;;  %v564_v26 = vadd.f32 %v563_v24, %v562_v20 }
 0x402   :  { %v571_v27 = vmul.f32 %v561_v21, %v561_v21  ;;  %v569_v28 = vmul.f32 0.015625, %v567_v23  ;;  %583 = vperm.xlu1 %2141, %v561_v21  }
 0x403   :  { %v570_v29 = vmul.f32 %v560_v25, %v560_v25  ;;  %v568_v30 = vmul.f32 0.015625, %v564_v26  ;;  %578 = vperm.xlu0 %2140, %v560_v25  }
 0x404   :  { %v573_v31 = vsub.f32 %v569_v28, %v571_v27  ;;  %v1776_v28 = vld [vmem:[%s2562_s5] ss:$0 sm:$0xff] }
 0x405   :  { %v572_v32 = vsub.f32 %v568_v30, %v570_v29 }
 0x406   :  { %v575_v33 = vmax.f32 %v573_v31, 0.0 }
 0x407   :  { %v574_v34 = vmax.f32 %v572_v32, 0.0 }
 0x408   :  { %v591_v35 = vadd.f32 1e-05, %v575_v33 }
 0x409   :  { %v590_v36 = vadd.f32 1e-05, %v574_v34 }
 0x40a   :  { %2152 = vrsqrt.f32 %v591_v35 }
 0x40b   :  { %2154 = vrsqrt.f32 %v590_v36 }
 0x414   :  { %v2153_v37 = vpop.eup %2152 }
 0x415   :  { %v2155_v38 = vpop.eup %2154  ;;  %601 = vperm.xlu1 %2141, %v2153_v37  }
 0x416   :  { %596 = vperm.xlu0 %2140, %v2155_v38  }
 0x481   :  { %v584_v39 = vpop.permute.xlu1 %583 }
 0x482   :  { %v579_v40 = vpop.permute.xlu0 %578  ;;  %v587_v41 = vsub.f32 %v2323_v57, %v584_v39  ;;  %v589_v42 = vsub.f32 %v354_v63, %v584_v39 }
 0x483   :  { %v586_v43 = vsub.f32 %v2317_v51, %v579_v40  ;;  %v588_v44 = vsub.f32 %v2325_v58, %v579_v40 }
 0x494   :  { %v602_v45 = vpop.permute.xlu1 %601 }
 0x495   :  { %v605_v48 = vmul.f32 %v602_v45, %v587_v41  ;;  %v607_v49 = vmul.f32 %v602_v45, %v589_v42  ;;  %v597_v50 = vpop.permute.xlu0 %596 }
 0x496   :  { %v604_v52 = vmul.f32 %v597_v50, %v586_v43  ;;  %v606_v53 = vmul.f32 %v597_v50, %v588_v44 }
 0x497   :  { %v609_v54 = vsel %vm221_vm4, %v605_v48, -inf  ;;  %v618_v51 = vsel %vm221_vm4, %v607_v49, -inf }
 0x498   :  { %v608_v56 = vsel %vm221_vm4, %v604_v52, -inf  ;;  %v617_v57 = vsel %vm221_vm4, %v606_v53, -inf  ;;  %v630_v58 = vpack.c.bf16 %v605_v48, %v604_v52  ;;  %v631_v59 = vpack.c.bf16 %v607_v49, %v606_v53 }
 0x499   :  { %v610_v60 = vmax.f32 %v608_v56, %v609_v54  ;;  %v619_v61 = vmax.f32 %v617_v57, %v618_v51  ;;  %v2204_v54 = vmov 0.0|0.0  }
 0x49a   :  { %1959 = vmatpush3.bf16.msra.mxu0 %v630_v58  ;;  %1965 = vmatpush3.bf16.msra.mxu1 %v631_v59  ;;  %v626_v59 = vld [vmem:[%s2565_s8] sm:$0xff] }
 0x49b   :  { %v611_v62 = vrot.slane %v610_v60, 4  ;;  %v620_v63 = vrot.slane %v619_v61, 4  ;;  %1970 = vmatprep.subr.bf16.mxu0 %v720_v55  ;;  %2099 = vmatprep.subr.bf16.mxu1 %v2202_v22 }
 0x49d   :  { %v612_v0 = vmax.f32 %v610_v60, %v611_v62  ;;  %v621_v1 = vmax.f32 %v619_v61, %v620_v63  ;;  %1961 = vmatmul.mubr.msk.bf16.vlgmr.msra.gmra.mrb[12].mxu0 %vm52_vm1, %v2282_v7  ;;  %1967 = vmatmul.mubr.msk.bf16.vlgmr.msra.gmra.mrb[12].mxu1 %vm52_vm1, %v2287_v8  ;;  %v627_v60 = vld [vmem:[%s2565_s8 + $0x8] sm:$0xff] }
 0x49e   :  { %1971 = vmatpush3.bf16.msra.mxu0 %v720_v55  ;;  %2100 = vmatpush3.bf16.msra.mxu1 %v2202_v22 }
 0x49f   :  { %v613_v2 = vrot.slane %v612_v0, 2  ;;  %v622_v4 = vrot.slane %v621_v1, 2  ;;  %2101 = vmatprep.subr.bf16.mxu1 %v2202_v22  ;;  %1972 = vmatprep.subr.bf16.mxu0 %v721_v16 }
 0x4a1   :  { %v614_v5 = vmax.f32 %v612_v0, %v613_v2  ;;  %v623_v6 = vmax.f32 %v621_v1, %v622_v4  ;;  %v2118_v4 = vpack.c.bf16 %v627_v60, %v626_v59 }
 0x4a2   :  { %2102 = vmatpush3.bf16.msra.mxu1 %v2202_v22  ;;  %1973 = vmatpush3.bf16.msra.mxu0 %v721_v16 }
 0x4a3   :  { %v615_v9 = vrot.slane %v614_v5, 1  ;;  %v624_v10 = vrot.slane %v623_v6, 1  ;;  %2107 = vmatprep.subr.bf16.mxu1 %v2202_v22  ;;  %2103 = vmatprep.subr.bf16.mxu0 %v2202_v22 }
 0x4a5   :  { %v616_v11 = vmax.f32 %v614_v5, %v615_v9  ;;  %v625_v12 = vmax.f32 %v623_v6, %v624_v10  ;;  %v628_v9 = vld [vmem:[%s2565_s8 + $0x10] sm:$0xff]  ;;  %v629_v10 = vld [vmem:[%s2565_s8 + $0x18] sm:$0xff] }
 0x4a6   :  { %v2121_v14 = vpack.c.bf16 %v629_v10, %v628_v9 }
 0x4a7   :  { %v2375_v13 = vsel %vm1197_vm6, %v625_v12, %v616_v11 }
 0x570   :  { %v666_v17 = vpop.f32.mrb[12].mxu0  ;;  %v707_v18 = vpop.f32.mrb[12].mxu1 }
 0x571   :  { %v1962_v19 = vpop.f32.mrb[13].mxu0  ;;  %v1968_v20 = vpop.f32.mrb[13].mxu1 }
 0x572   :  { %v669_v21 = vpop.f32.mrb[14].mxu0  ;;  %v710_v23 = vpop.f32.mrb[14].mxu1 }
 0x573   :  { %v714_v24 = vpack.c.bf16 %v669_v21, %v666_v17  ;;  %v715_v25 = vpack.c.bf16 %v710_v23, %v707_v18  ;;  %v1963_v26 = vpop.f32.mrb[15].mxu0  ;;  %v1969_v27 = vpop.f32.mrb[15].mxu1 }
 0x575   :  { %1974 = vmatprep.mubr.msk.bf16.mxu0 %vm221_vm4, %v714_v24 }
 0x576   :  { %1975 = vmatmul.mubr.msk.bf16.vlgmr.msra.gmra.mrb[16].mxu0 %vm221_vm4, %v715_v25 }
 0x577   :  { %2104 = vmatpush3.bf16.msra.mxu0 %v2202_v22 }
 0x578   :  { %2105 = vmatprep.subr.bf16.mxu0 %v2202_v22 }
 0x57b   :  { %2106 = vmatpush3.bf16.msra.mxu0 %v2202_v22 }
 0x57c   :  { %2111 = vmatprep.subr.bf16.mxu0 %v2204_v54 }
 0x649   :  { %v1976_v29 = vpop.f32.mrb[16].mxu0 }
 0x64a   :  { %v769_v30 = vpop.f32.mrb[17].mxu0  ;;  %v778_v33 = vadd.f32 %v1976_v29, %v1776_v28 }
 0x64b   :  { %v770_v31 = vadd.f32 %v1776_v28, %v769_v30  ;;  %v1977_v32 = vpop.f32.mrb[18].mxu0 }
 0x64c   :  { %v772_v34 = vpop.f32.mrb[19].mxu0  ;;  %v781_v37 = vadd.f32 %v1977_v32, %v1776_v28  ;;  %v786_v39 = vmul.f32 %v778_v33, %v778_v33 }
 0x64d   :  { %v784_v35 = vmul.f32 %v770_v31, %v770_v31  ;;  %v773_v36 = vadd.f32 %v1776_v28, %v772_v34 }
 0x64e   :  { %v787_v40 = vmul.f32 %v781_v37, %v781_v37 }
 0x64f   :  { %v785_v38 = vmul.f32 %v773_v36, %v773_v36  ;;  %1986 = vmatprep.mubr.msk.f32.mxu1 %vm221_vm4, %v784_v35 }
 0x651   :  { %1987 = vmatmul.mubr.msk.f32.vlgmr.msra.gmra.mrb[16].mxu1 %vm221_vm4, %v785_v38 }
 0x652   :  { %1989 = vmatprep.mubr.msk.f32.mxu1 %vm221_vm4, %v786_v39  ;;  %2108 = vmatpush3.bf16.msra.mxu1 %v2202_v22 }
 0x653   :  { %2109 = vmatprep.subr.bf16.mxu1 %v2202_v22 }
 0x655   :  { %1990 = vmatmul.mubr.msk.f32.gmra.mrb[18].mxu1 %vm221_vm4, %v787_v40 }
 0x656   :  { %2110 = vmatpush3.bf16.msra.mxu1 %v2202_v22 }
 0x657   :  { %2117 = vmatprep.subr.bf16.mxu1 %v2204_v54 }
 0x724   :  { %v1988_v41 = vpop.f32.mrb[16].mxu1 }
 0x725   :  { %v886_v42 = vmax.f32 %v1988_v41, 1e-24  ;;  %v866_v43 = vpop.f32.mrb[17].mxu1 }
 0x726   :  { %v885_v44 = vmax.f32 %v866_v43, 1e-24 }
 0x727   :  { %2156 = vrsqrt.f32 %v886_v42 }
 0x728   :  { %2158 = vrsqrt.f32 %v885_v44  ;;  %v1991_v45 = vpop.f32.mrb[18].mxu1 }
 0x729   :  { %v888_v46 = vmax.f32 %v1991_v45, 1e-24  ;;  %v876_v47 = vpop.f32.mrb[19].mxu1 }
 0x72a   :  { %v887_v48 = vmax.f32 %v876_v47, 1e-24 }
 0x72b   :  { %2160 = vrsqrt.f32 %v888_v46 }
 0x72c   :  { %2162 = vrsqrt.f32 %v887_v48 }
 0x731   :  { %v2157_v49 = vpop.eup %2156 }
 0x732   :  { %v2159_v50 = vpop.eup %2158  ;;  %900 = vperm.xlu1 %2141, %v2157_v49  }
 0x733   :  { %895 = vperm.xlu0 %2140, %v2159_v50  }
 0x735   :  { %v2161_v52 = vpop.eup %2160 }
 0x736   :  { %v2163_v53 = vpop.eup %2162  ;;  %910 = vperm.xlu1 %2141, %v2161_v52  }
 0x737   :  { %905 = vperm.xlu0 %2140, %v2163_v53   ;;  %v1191_v53 = vld [vmem:[%s2565_s8 + $0x20] sm:$0xff] }
 0x7b1   :  { %v901_v51 = vpop.permute.xlu1 %900 }
 0x7b2   :  { %v914_v55 = vmul.f32 %v901_v51, %v773_v36  ;;  %v896_v56 = vpop.permute.xlu0 %895  ;;  %v1192_v51 = vld [vmem:[%s2565_s8 + $0x28] sm:$0xff] }
 0x7b3   :  { %v913_v57 = vmul.f32 %v896_v56, %v770_v31  ;;  %v1193_v56 = vld [vmem:[%s2565_s8 + $0x30] sm:$0xff] }
 0x7b4   :  { %v2401_v58 = vmax.f32 %v914_v55, 0.0  ;;  %v2112_v55 = vpack.c.bf16 %v1192_v51, %v1191_v53 }
 0x7b5   :  { %v2409_v61 = vmax.f32 %v913_v57, 0.0  ;;  %v911_v62 = vpop.permute.xlu1 %910  ;;  %v1194_v57 = vld [vmem:[%s2565_s8 + $0x38] sm:$0xff] }
 0x7b6   :  { %v916_v63 = vmul.f32 %v911_v62, %v781_v37  ;;  %v906_v0 = vpop.permute.xlu0 %905  ;;  %v1019_v5 = vmul.f32 %v2401_v58, %v2401_v58  ;;  %v2115_v59 = vpack.c.bf16 %v1194_v57, %v1193_v56 }
 0x7b7   :  { %v1018_v1 = vmul.f32 %v2409_v61, %v2409_v61  ;;  %v915_v2 = vmul.f32 %v906_v0, %v778_v33  ;;  %2000 = vmatprep.mubr.msk.f32.mxu0 %vm221_vm4, %v2409_v61 }
 0x7b8   :  { %v2417_v6 = vmax.f32 %v916_v63, 0.0  ;;  %2001 = vmatmul.mubr.msk.f32.vlgmr.msra.gmra.mrb[20].mxu0 %vm221_vm4, %v2401_v58 }
 0x7b9   :  { %v2427_v11 = vmax.f32 %v915_v2, 0.0  ;;  %2014 = vmatprep.mubr.msk.f32.mxu1 %vm221_vm4, %v1018_v1  ;;  %2113 = vmatpush3.bf16.msra.mxu0 %v2112_v55 }
 0x7ba   :  { %2015 = vmatmul.mubr.msk.f32.vlgmr.msra.gmra.mrb[20].mxu1 %vm221_vm4, %v1019_v5  ;;  %v1021_v15 = vmul.f32 %v2417_v6, %v2417_v6  ;;  %2114 = vmatprep.subr.bf16.mxu0 %v2204_v54 }
 0x7bb   :  { %v1020_v12 = vmul.f32 %v2427_v11, %v2427_v11  ;;  %2003 = vmatprep.mubr.msk.f32.mxu0 %vm221_vm4, %v2427_v11  ;;  %2119 = vmatpush3.bf16.msra.mxu1 %v2118_v4 }
 0x7bc   :  { %2004 = vmatmul.mubr.msk.f32.gmra.mrb[22].mxu0 %vm221_vm4, %v2417_v6  ;;  %2120 = vmatprep.subr.bf16.mxu1 %v2204_v54 }
 0x7bd   :  { %2017 = vmatprep.mubr.msk.f32.mxu1 %vm221_vm4, %v1020_v12  ;;  %2028 = vmatprep.mubr.msk.f32.mxu0 %vm2201_vm0, %v2200_v3 }
 0x7be   :  { %2018 = vmatmul.mubr.msk.f32.gmra.mrb[22].mxu1 %vm221_vm4, %v1021_v15  ;;  %2116 = vmatpush3.bf16.msra.mxu0 %v2115_v59 }
 0x7bf   :  { %2122 = vmatpush3.bf16.msra.mxu1 %v2121_v14  ;;  %2039 = vmatprep.mubr.msk.f32.mxu1 %vm2201_vm0, %v2200_v3 }
 0x7c0   :  { %2048 = vmatprep.subr.bf16.mxu1 %v2200_v3  ;;  %2042 = vmatprep.subr.bf16.mxu0 %v2200_v3 }
 0x7c2   :  { %2040 = vmatmul.mubr.msk.f32.vlgmr.msra.gmra.mrb[24].mxu1 %vm221_vm4, %v2375_v13 }
 0x7c3   :  { %2050 = vmatprep.mubr.msk.bf16.mxu1 %vm2201_vm0, %v2200_v3 }
 0x88b   :  { %v2002_v16 = vpop.f32.mrb[20].mxu0 }
 0x88c   :  { %v999_v17 = vpop.f32.mrb[21].mxu0  ;;  %v1122_v21 = vsel %vm553_vm5, %v2002_v16, 0.0 }
 0x88d   :  { %v2016_v18 = vpop.f32.mrb[20].mxu1  ;;  %v1119_v25 = vsel %vm553_vm5, %v999_v17, 0.0 }
 0x88e   :  { %v1100_v19 = vpop.f32.mrb[21].mxu1  ;;  %v1130_v13 = vsel %vm553_vm5, %v2016_v18, 0.0 }
 0x88f   :  { %v2005_v20 = vpop.f32.mrb[22].mxu0  ;;  %v1127_v32 = vsel %vm553_vm5, %v1100_v19, 0.0 }
 0x890   :  { %v1123_v23 = vsel %vm553_vm5, %v2005_v20, 0.0  ;;  %v1009_v24 = vpop.f32.mrb[23].mxu0 }
 0x891   :  { %v1124_v26 = vadd.f32 %v1123_v23, %v1122_v21  ;;  %v1120_v27 = vsel %vm553_vm5, %v1009_v24, 0.0  ;;  %v2019_v28 = vpop.f32.mrb[22].mxu1 }
 0x892   :  { %v1121_v29 = vadd.f32 %v1120_v27, %v1119_v25  ;;  %v1131_v30 = vsel %vm553_vm5, %v2019_v28, 0.0  ;;  %v1110_v31 = vpop.f32.mrb[23].mxu1 }
 0x893   :  { %v1126_v33 = vmul.f32 0.015625, %v1124_v26  ;;  %v1132_v34 = vadd.f32 %v1131_v30, %v1130_v13  ;;  %v1128_v35 = vsel %vm553_vm5, %v1110_v31, 0.0 }
 0x894   :  { %v1125_v36 = vmul.f32 0.015625, %v1121_v29  ;;  %v1129_v37 = vadd.f32 %v1128_v35, %v1127_v32 }
 0x895   :  { %v1136_v38 = vmul.f32 %v1126_v33, %v1126_v33  ;;  %v1134_v39 = vmul.f32 0.015625, %v1132_v34  ;;  %1148 = vperm.xlu1 %2141, %v1126_v33   ;;  %v2459_v40 = vpop.f32.mrb[24].mxu1  ;;  %v1434_v33 = vld [vmem:[%s2563_s6 + $0x10] sm:$0xff]  ;;  %v1435_v34 = vld [vmem:[%s2563_s6 + $0x18] sm:$0xff] }
 0x896   :  { %v1135_v41 = vmul.f32 %v1125_v36, %v1125_v36  ;;  %v1133_v42 = vmul.f32 0.015625, %v1129_v37  ;;  %1143 = vperm.xlu0 %2140, %v1125_v36   ;;  %v2041_v43 = vpop.f32.mrb[25].mxu1 }
 0x897   :  { %v1138_v44 = vsub.f32 %v1134_v39, %v1136_v38 }
 0x898   :  { %v1137_v45 = vsub.f32 %v1133_v42, %v1135_v41 }
 0x899   :  { %v1140_v46 = vmax.f32 %v1138_v44, 0.0 }
 0x89a   :  { %v1139_v47 = vmax.f32 %v1137_v45, 0.0 }
 0x89b   :  { %v1156_v48 = vadd.f32 1e-05, %v1140_v46 }
 0x89c   :  { %v1155_v49 = vadd.f32 1e-05, %v1139_v47 }
 0x89d   :  { %2164 = vrsqrt.f32 %v1156_v48 }
 0x89e   :  { %2166 = vrsqrt.f32 %v1155_v49  ;;  %v1795_v49 = vld [vmem:[%s2564_s7] ss:$0 sm:$0xff] }
 0x8a7   :  { %v2165_v50 = vpop.eup %2164 }
 0x8a8   :  { %v2167_v52 = vpop.eup %2166  ;;  %1166 = vperm.xlu1 %2141, %v2165_v50  }
 0x8a9   :  { %1161 = vperm.xlu0 %2140, %v2167_v52  }
 0x914   :  { %v1149_v60 = vpop.permute.xlu1 %1148 }
 0x915   :  { %v1144_v62 = vpop.permute.xlu0 %1143  ;;  %v1152_v63 = vsub.f32 %v2401_v58, %v1149_v60  ;;  %v1154_v0 = vsub.f32 %v2417_v6, %v1149_v60 }
 0x916   :  { %v1151_v1 = vsub.f32 %v2409_v61, %v1144_v62  ;;  %v1153_v2 = vsub.f32 %v2427_v11, %v1144_v62 }
 0x927   :  { %v1167_v4 = vpop.permute.xlu1 %1166 }
 0x928   :  { %v1170_v5 = vmul.f32 %v1167_v4, %v1152_v63  ;;  %v1172_v9 = vmul.f32 %v1167_v4, %v1154_v0  ;;  %v1162_v10 = vpop.permute.xlu0 %1161 }
 0x929   :  { %v1169_v12 = vmul.f32 %v1162_v10, %v1151_v1  ;;  %v1171_v14 = vmul.f32 %v1162_v10, %v1153_v2 }
 0x92a   :  { %v1174_v15 = vsel %vm221_vm4, %v1170_v5, -inf  ;;  %v1183_v16 = vsel %vm221_vm4, %v1172_v9, -inf }
 0x92b   :  { %v1173_v17 = vsel %vm221_vm4, %v1169_v12, -inf  ;;  %v1182_v58 = vsel %vm221_vm4, %v1171_v14, -inf  ;;  %v1347_v18 = vpack.c.bf16 %v1172_v9, %v1171_v14  ;;  %v1346_v30 = vpack.c.bf16 %v1170_v5, %v1169_v12 }
 0x92c   :  { %v1175_v6 = vmax.f32 %v1173_v17, %v1174_v15  ;;  %v1184_v19 = vmax.f32 %v1182_v58, %v1183_v16  ;;  %v1651_v17 = vld [vmem:[%s2565_s8 + $0x40] sm:$0xff]  ;;  %v1652_v58 = vld [vmem:[%s2565_s8 + $0x48] sm:$0xff] }
 0x92d   :  { %2049 = vmatpush3.bf16.msra.mxu1 %v1347_v18  ;;  %v2128_v18 = vpack.c.bf16 %v1652_v58, %v1651_v17 }
 0x92e   :  { %v1176_v61 = vrot.slane %v1175_v6, 4  ;;  %v1185_v11 = vrot.slane %v1184_v19, 4  ;;  %2123 = vmatprep.subr.bf16.mxu1 %v2202_v22 }
 0x930   :  { %v1177_v20 = vmax.f32 %v1175_v6, %v1176_v61  ;;  %v1186_v21 = vmax.f32 %v1184_v19, %v1185_v11  ;;  %2051 = vmatmul.mubr.msk.bf16.vlgmr.msra.gmra.mrb[28].mxu1 %vm52_vm1, %v2287_v8  ;;  %v1432_v8 = vld [vmem:[%s2563_s6] sm:$0xff]  ;;  %v1653_v6 = vld [vmem:[%s2565_s8 + $0x50] sm:$0xff]  ;;  %v1654_v19 = vld [vmem:[%s2565_s8 + $0x58] sm:$0xff] }
 0x931   :  { %2124 = vmatpush3.bf16.msra.mxu1 %v2202_v22  ;;  %v2131_v61 = vpack.c.bf16 %v1654_v19, %v1653_v6 }
 0x932   :  { %v1178_v23 = vrot.slane %v1177_v20, 2  ;;  %v1187_v24 = vrot.slane %v1186_v21, 2  ;;  %2125 = vmatprep.subr.bf16.mxu1 %v2202_v22 }
 0x934   :  { %v1179_v25 = vmax.f32 %v1177_v20, %v1178_v23  ;;  %v1188_v26 = vmax.f32 %v1186_v21, %v1187_v24 }
 0x935   :  { %2126 = vmatpush3.bf16.msra.mxu1 %v2202_v22  ;;  %v1433_v22 = vld [vmem:[%s2563_s6 + $0x8] sm:$0xff] }
 0x936   :  { %v1180_v27 = vrot.slane %v1179_v25, 1  ;;  %v1189_v28 = vrot.slane %v1188_v26, 1  ;;  %v1436_v32 = vpack.c.bf16 %v1433_v22, %v1432_v8 }
 0x938   :  { %v1181_v13 = vmax.f32 %v1179_v25, %v1180_v27  ;;  %v1190_v29 = vmax.f32 %v1188_v26, %v1189_v28 }
 0x93a   :  { %v1198_v31 = vsel %vm1197_vm6, %v1190_v29, %v1181_v13 }
 0x93b   :  { %2029 = vmatmul.mubr.msk.f32.vlgmr.msra.gmra.mrb[24].mxu0 %vm221_vm4, %v1198_v31 }
 0x93c   :  { %2043 = vmatpush3.bf16.msra.mxu0 %v1346_v30  ;;  %2044 = vmatprep.mubr.msk.bf16.mxu0 %vm2201_vm0, %v2200_v3 }
 0x93d   :  { %2054 = vmatprep.subr.bf16.mxu0 %v1436_v32 }
 0x93f   :  { %2045 = vmatmul.mubr.msk.bf16.vlgmr.msra.gmra.mrb[28].mxu0 %vm52_vm1, %v2282_v7  ;;  %v1437_v7 = vpack.c.bf16 %v1435_v34, %v1434_v33 }
 0x940   :  { %2055 = vmatpush3.bf16.msra.mxu0 %v1436_v32 }
 0x941   :  { %2056 = vmatprep.subr.bf16.mxu0 %v1437_v7 }
 0x944   :  { %2057 = vmatpush3.bf16.msra.mxu0 %v1437_v7 }
 0x945   :  { %2127 = vmatprep.subr.bf16.mxu0 %v2204_v54 }
 0xa03   :  { %v1423_v35 = vpop.f32.mrb[28].mxu1 }
 0xa04   :  { %v2052_v36 = vpop.f32.mrb[29].mxu1 }
 0xa05   :  { %v1426_v37 = vpop.f32.mrb[30].mxu1 }
 0xa06   :  { %v1431_v38 = vpack.c.bf16 %v1426_v37, %v1423_v35  ;;  %v2053_v39 = vpop.f32.mrb[31].mxu1 }
 0xa0e   :  { %v1267_v41 = vpop.f32.mrb[24].mxu0 }
 0xa0f   :  { %v2509_v42 = vadd.f32 %v2459_v40, %v1267_v41  ;;  %v2030_v43 = vpop.f32.mrb[25].mxu0 }
 0xa12   :  { %v1382_v44 = vpop.f32.mrb[28].mxu0 }
 0xa13   :  { %v2046_v45 = vpop.f32.mrb[29].mxu0 }
 0xa14   :  { %v1385_v46 = vpop.f32.mrb[30].mxu0  ;;  %v1803_v45 = vld [vmem:[%s2566_s9] ss:$0 sm:$0xff] }
 0xa15   :  { %v1430_v47 = vpack.c.bf16 %v1385_v46, %v1382_v44  ;;  %v2047_v48 = vpop.f32.mrb[31].mxu0 }
 0xa17   :  { %2058 = vmatprep.mubr.msk.bf16.mxu0 %vm221_vm4, %v1430_v47 }
 0xa18   :  { %2059 = vmatmul.mubr.msk.bf16.vlgmr.msra.gmra.mrb[32].mxu0 %vm221_vm4, %v1431_v38 }
 0xa19   :  { %2084 = vmatprep.mubr.msk.f32.mxu0 %vm2201_vm0, %v2200_v3  ;;  %2129 = vmatpush3.bf16.msra.mxu0 %v2128_v18 }
 0xa1a   :  { %2130 = vmatprep.subr.bf16.mxu0 %v2204_v54 }
 0xa1d   :  { %2132 = vmatpush3.bf16.msra.mxu0 %v2131_v61 }
 0xaeb   :  { %v2060_v50 = vpop.f32.mrb[32].mxu0 }
 0xaec   :  { %v1485_v40 = vpop.f32.mrb[33].mxu0  ;;  %v1494_v51 = vadd.f32 %v2060_v50, %v1795_v49 }
 0xaed   :  { %v1486_v52 = vadd.f32 %v1795_v49, %v1485_v40  ;;  %v2061_v53 = vpop.f32.mrb[34].mxu0 }
 0xaee   :  { %v1488_v55 = vpop.f32.mrb[35].mxu0  ;;  %v1497_v59 = vadd.f32 %v2061_v53, %v1795_v49  ;;  %v1502_v62 = vmul.f32 %v1494_v51, %v1494_v51 }
 0xaef   :  { %v1500_v56 = vmul.f32 %v1486_v52, %v1486_v52  ;;  %v1489_v57 = vadd.f32 %v1795_v49, %v1488_v55 }
 0xaf0   :  { %v1503_v3 = vmul.f32 %v1497_v59, %v1497_v59 }
 0xaf1   :  { %v1501_v60 = vmul.f32 %v1489_v57, %v1489_v57  ;;  %2070 = vmatprep.mubr.msk.f32.mxu1 %vm221_vm4, %v1500_v56 }
 0xaf3   :  { %2071 = vmatmul.mubr.msk.f32.vlgmr.msra.gmra.mrb[26].mxu1 %vm221_vm4, %v1501_v60 }
 0xaf4   :  { %2073 = vmatprep.mubr.msk.f32.mxu1 %vm221_vm4, %v1502_v62 }
 0xaf7   :  { %2074 = vmatmul.mubr.msk.f32.gmra.mrb[32].mxu1 %vm221_vm4, %v1503_v3 }
 0xbc6   :  { %v2072_v63 = vpop.f32.mrb[26].mxu1 }
 0xbc7   :  { %v1602_v0 = vmax.f32 %v2072_v63, 1e-24  ;;  %v1582_v1 = vpop.f32.mrb[27].mxu1 }
 0xbc8   :  { %v1601_v2 = vmax.f32 %v1582_v1, 1e-24 }
 0xbc9   :  { %2168 = vrsqrt.f32 %v1602_v0 }
 0xbca   :  { %2170 = vrsqrt.f32 %v1601_v2  ;;  %v2075_v4 = vpop.f32.mrb[32].mxu1 }
 0xbcb   :  { %v1604_v5 = vmax.f32 %v2075_v4, 1e-24  ;;  %v1592_v9 = vpop.f32.mrb[33].mxu1 }
 0xbcc   :  { %v1603_v10 = vmax.f32 %v1592_v9, 1e-24 }
 0xbcd   :  { %2172 = vrsqrt.f32 %v1604_v5 }
 0xbce   :  { %2174 = vrsqrt.f32 %v1603_v10 }
 0xbd3   :  { %v2169_v12 = vpop.eup %2168 }
 0xbd4   :  { %v2171_v14 = vpop.eup %2170  ;;  %1616 = vperm.xlu1 %2141, %v2169_v12  }
 0xbd5   :  { %1611 = vperm.xlu0 %2140, %v2171_v14  }
 0xbd7   :  { %v2173_v15 = vpop.eup %2172 }
 0xbd8   :  { %v2175_v16 = vpop.eup %2174  ;;  %1626 = vperm.xlu1 %2141, %v2173_v15  }
 0xbd9   :  { %1621 = vperm.xlu0 %2140, %v2175_v16  }
 0xc53   :  { %v1617_v11 = vpop.permute.xlu1 %1616 }
 0xc54   :  { %v1630_v20 = vmul.f32 %v1617_v11, %v1489_v57  ;;  %v1612_v21 = vpop.permute.xlu0 %1611 }
 0xc55   :  { %v1629_v23 = vmul.f32 %v1612_v21, %v1486_v52 }
 0xc56   :  { %v1634_v24 = vsel %vm221_vm4, %v1630_v20, -inf }
 0xc57   :  { %v1633_v25 = vsel %vm221_vm4, %v1629_v23, -inf  ;;  %v1627_v26 = vpop.permute.xlu1 %1626 }
 0xc58   :  { %v1635_v54 = vmax.f32 %v1633_v25, %v1634_v24  ;;  %v1632_v27 = vmul.f32 %v1627_v26, %v1497_v59  ;;  %v1622_v28 = vpop.permute.xlu0 %1621 }
 0xc59   :  { %v1631_v13 = vmul.f32 %v1622_v28, %v1494_v51 }
 0xc5a   :  { %v1636_v29 = vrot.slane %v1635_v54, 4  ;;  %v1643_v30 = vsel %vm221_vm4, %v1632_v27, -inf }
 0xc5b   :  { %v1642_v31 = vsel %vm221_vm4, %v1631_v13, -inf }
 0xc5c   :  { %v1637_v8 = vmax.f32 %v1635_v54, %v1636_v29  ;;  %v1644_v22 = vmax.f32 %v1642_v31, %v1643_v30 }
 0xc5e   :  { %v1638_v32 = vrot.slane %v1637_v8, 2  ;;  %v1645_v33 = vrot.slane %v1644_v22, 4 }
 0xc60   :  { %v1639_v34 = vmax.f32 %v1637_v8, %v1638_v32  ;;  %v1646_v7 = vmax.f32 %v1644_v22, %v1645_v33 }
 0xc62   :  { %v1647_v35 = vrot.slane %v1646_v7, 2  ;;  %v1640_v36 = vrot.slane %v1639_v34, 1 }
 0xc64   :  { %v1648_v37 = vmax.f32 %v1646_v7, %v1647_v35  ;;  %v1641_v39 = vmax.f32 %v1639_v34, %v1640_v36 }
 0xc66   :  { %v1649_v38 = vrot.slane %v1648_v37, 1 }
 0xc68   :  { %v1650_v41 = vmax.f32 %v1648_v37, %v1649_v38 }
 0xc6a   :  { %v1657_v43 = vsel %vm1197_vm6, %v1650_v41, %v1641_v39 }
 0xc6b   :  { %2085 = vmatmul.mubr.msk.f32.vlgmr.msra.gmra.mrb[26].mxu0 %vm221_vm4, %v1657_v43 }
 0xd3e   :  { %v1726_v44 = vpop.f32.mrb[26].mxu0 }
 0xd3f   :  { %v1730_v46 = vadd.f32 %v1726_v44, %v2509_v42  ;;  %v2086_v47 = vpop.f32.mrb[27].mxu0 }
 0xd41   :  { %v1738_v48 = vadd.f32 %v1803_v45, %v1730_v46 }
 0xd43   :  { %1740 = vst.msk [vmem:[#allocation2] sm:$0x3] %vm1739_vm7, %v1738_v48 }
 0xd44   :  { %2187 = shalt.err (!%p2184_p4)
}
 0xd45   :  { %s2188_s9 = scalar_lea.hbm %s2567_s10, 32 }
 0xd46   :  { %p2189_p5 = scmp.ne.s32.totalorder %s2567_s10, %s2188_s9  ;;  %p2192_p6 = scmp.lt.u32.totalorder %s2188_s9, %s2567_s10 }
 0xd48   :  { %p2194_p7 = pnand %p2192_p6, %p2189_p5 }
 0xd4a   :  { %2197 = shalt.err (!%p2194_p7)
}
 0xd4b   :  { %1750 = dma.vmem_to_hbm [thread:$0]  %s1748_s21, 32, %s2567_s10, [#allocation3]  }
 0xd4c   :  { %2198 = dma.done.wait [#allocation3], 32  }
 0xd4d   :  { %2199 = vsyncadd [#allocation3], 4294967264 }
 0xd4e   :  { %1754 = vsyncpa [#allocation3], 1 }

</bundles_post_ra>
